<compile_context>
chip_gen: v7x
topology: tpu7x:2x2x1
jax: 0.10.0
libtpu: 0.0.40
codegen_flags: <defaults>
</compile_context>

<pallas_src>
import jax
import jax.numpy as jnp
from jax.experimental import pallas as pl
from jax.experimental.pallas import tpu as pltpu

SUBLANE = 8


def _round_up(x, m):
    return ((x + m - 1) // m) * m


def _nbytes(a):
    return int(a.size) * int(jnp.dtype(a.dtype).itemsize)


def _mlp_kernel(x_ref, w1_ref, b1_ref, w2_ref, b2_ref, w3_ref, b3_ref, o_ref):
    """Fused 3-layer MLP forward for one batch tile, fully VMEM-resident.

    MXU operands may be bf16; bias add / ReLU / accumulation are f32.
    """
    cdt = w1_ref.dtype                      # MXU operand dtype (bf16 or f32)
    x = x_ref[...].astype(cdt)

    # Layer 1: Linear + ReLU
    h1 = jnp.dot(x, w1_ref[...], preferred_element_type=jnp.float32) + b1_ref[...]
    h1 = jnp.maximum(h1, 0.0)

    # Layer 2: Linear + ReLU
    h2 = jnp.dot(h1.astype(cdt), w2_ref[...],
                 preferred_element_type=jnp.float32) + b2_ref[...]
    h2 = jnp.maximum(h2, 0.0)

    # Layer 3: Linear (logits)
    out = jnp.dot(h2.astype(cdt), w3_ref[...],
                  preferred_element_type=jnp.float32) + b3_ref[...]
    o_ref[...] = out.astype(o_ref.dtype)


def prepare_params(params, weight_dtype=jnp.bfloat16):
    """One-time parameter preparation.  Call once, cache the result, and pass
    it to multi_disc_domain_forward on every step (keeps the per-call forward
    free of cast/pad fusions)."""
    f32 = jnp.float32
    return {
        "w1": jnp.asarray(params["w1"], weight_dtype),
        "b1": jnp.asarray(params["b1"], f32).reshape(1, -1),
        "w2": jnp.asarray(params["w2"], weight_dtype),
        "b2": jnp.asarray(params["b2"], f32).reshape(1, -1),
        "w3": jnp.asarray(params["w3"], weight_dtype),
        "b3": jnp.asarray(params["b3"], f32).reshape(1, -1),
    }


@jax.jit
def multi_disc_domain_forward(s, prep):
    """Pallas forward pass of MultiDiscDomain.

    s:    (B, s_dim) float32
    prep: output of prepare_params()
    returns (B, domain_dim) float32
    """
    w1, b1 = prep["w1"], prep["b1"]
    w2, b2 = prep["w2"], prep["b2"]
    w3, b3 = prep["w3"], prep["b3"]

    B, s_dim = s.shape
    h_dim = w1.shape[1]
    domain_dim = w3.shape[1]
    f32 = jnp.float32

    # ---- batch tiling ---------------------------------------------------
    if B <= 16:
        tile_b = _round_up(max(B, 1), SUBLANE)          # single grid step
    elif B <= 256:
        tile_b = _round_up((B + 1) // 2, SUBLANE)       # >=2 steps -> both v7x TCs
    else:
        tile_b = 128                                    # fills MXU M, VMEM-friendly
    b_pad = _round_up(B, tile_b)
    grid = (b_pad // tile_b,)

    x = s.astype(f32)
    if b_pad != B:
        x = jnp.zeros((b_pad, s_dim), f32).at[:B].set(x)

    # ---- VMEM budgeting --------------------------------------------------
    weight_bytes = sum(_nbytes(t) for t in (w1, b1, w2, b2, w3, b3))
    # Single-buffer the constant (grid-invariant) weight/bias blocks once they
    # are big enough to matter for the VMEM budget (v7x: 64 MiB/TC).
    const_mode = pl.Buffered(1) if weight_bytes > (4 << 20) else None
    n_weight_bufs = 1 if const_mode is not None else 2
    resident_bytes = (
        weight_bytes * n_weight_bufs
        + 2 * tile_b * s_dim * 4            # double-buffered x tiles
        + 2 * tile_b * domain_dim * 4       # double-buffered out tiles
        + 2 * tile_b * h_dim * 4            # f32 h1/h2 temporaries
    )
    vmem_limit = None
    if resident_bytes > (12 << 20):         # exceed v5e's 16 MiB scoped default
        vmem_limit = min(resident_bytes * 3 // 2, 64 << 20)
    # TODO(synk): for very large h_dim (w2 approaching VMEM capacity) add a
    # K-tiled reduction grid axis so w2 need not be fully VMEM-resident.

    def _const_spec(shape):
        if const_mode is None:
            return pl.BlockSpec(shape, lambda i: (0, 0))
        return pl.BlockSpec(shape, lambda i: (0, 0), pipeline_mode=const_mode)

    # Cost estimate from TRUE (unpadded) dims.
    flops = 2 * B * (s_dim * h_dim + h_dim * h_dim + h_dim * domain_dim)
    bytes_accessed = _nbytes(s) + weight_bytes + 4 * B * domain_dim

    out = pl.pallas_call(
        _mlp_kernel,
        out_shape=jax.ShapeDtypeStruct((b_pad, domain_dim), f32),
        grid_spec=pl.GridSpec(
            grid=grid,
            in_specs=[
                pl.BlockSpec((tile_b, s_dim), lambda i: (i, 0)),   # x tile
                _const_spec((s_dim, h_dim)),                       # w1
                _const_spec((1, h_dim)),                           # b1
                _const_spec((h_dim, h_dim)),                       # w2
                _const_spec((1, h_dim)),                           # b2
                _const_spec((h_dim, domain_dim)),                  # w3
                _const_spec((1, domain_dim)),                      # b3
            ],
            out_specs=pl.BlockSpec((tile_b, domain_dim), lambda i: (i, 0)),
        ),
        compiler_params=pltpu.CompilerParams(
            dimension_semantics=("parallel",),
            vmem_limit_bytes=vmem_limit,
        ),
        cost_estimate=pl.CostEstimate(
            flops=flops, transcendentals=0, bytes_accessed=bytes_accessed
        ),
    )(x, w1, b1, w2, b2, w3, b3)

    if b_pad != B:
        out = out[:B]
    return out


# ---------------------------------------------------------------------------
# Init / references (for the self-test below)
# ---------------------------------------------------------------------------
def init_params(key, s_dim, h_dim, domain_dim):
    """Deterministic PyTorch-style (uniform +/- 1/sqrt(fan_in)) init."""
    ks = jax.random.split(key, 6)

    def linear(kw, kb, fan_in, fan_out):
        bound = 1.0 / jnp.sqrt(fan_in)
        w = jax.random.uniform(kw, (fan_in, fan_out), jnp.float32, -bound, bound)
        b = jax.random.uniform(kb, (1, fan_out), jnp.float32, -bound, bound)
        return w, b

    w1, b1 = linear(ks[0], ks[1], s_dim, h_dim)
    w2, b2 = linear(ks[2], ks[3], h_dim, h_dim)
    w3, b3 = linear(ks[4], ks[5], h_dim, domain_dim)
    return {"w1": w1, "b1": b1, "w2": w2, "b2": b2, "w3": w3, "b3": b3}


def reference_forward_f32(s, p):
    """Exact module semantics (all f32)."""
    h1 = jnp.maximum(s @ p["w1"] + p["b1"], 0.0)
    h2 = jnp.maximum(h1 @ p["w2"] + p["b2"], 0.0)
    return h2 @ p["w3"] + p["b3"]


def reference_forward_prepared(s, prep):
    """Pure-JAX reference with the SAME precision pattern as the kernel."""
    cdt = prep["w1"].dtype
    f32 = jnp.float32
    h1 = jnp.maximum(
        jnp.dot(s.astype(cdt), prep["w1"], preferred_element_type=f32) + prep["b1"], 0.0)
    h2 = jnp.maximum(
        jnp.dot(h1.astype(cdt), prep["w2"], preferred_element_type=f32) + prep["b2"], 0.0)
    return jnp.dot(h2.astype(cdt), prep["w3"], preferred_element_type=f32) + prep["b3"]


if __name__ == "__main__":
    # cfg: s_dim=32, h_dim=64, domain_dim=8 ; batch=16
    B, S_DIM, H_DIM, DOMAIN_DIM = 16, 32, 64, 8

    key = jax.random.PRNGKey(0)
    k_x, k_p = jax.random.split(key)

    s = jax.random.normal(k_x, (B, S_DIM), dtype=jnp.float32)
    params = init_params(k_p, S_DIM, H_DIM, DOMAIN_DIM)

    prep = prepare_params(params)          # one-time; cached across calls
    out = multi_disc_domain_forward(s, prep)
    out = jax.block_until_ready(out)
    assert out.shape == (B, DOMAIN_DIM)

    # Check vs. a pure-JAX reference using the identical precision pattern.
    ref_same = reference_forward_prepared(s, prep)
    assert jnp.allclose(out, ref_same, atol=1e-3, rtol=1e-3), \
        "mismatch vs same-precision reference"

    # Check module semantics vs. full-f32 reference (bf16 weights contribute
    # ~1e-3 relative error).
    ref_f32 = reference_forward_f32(s, params)
    assert jnp.allclose(out, ref_f32, atol=3e-2, rtol=3e-2), \
        "mismatch vs f32 reference"

    print("KERNEL_OK")
</pallas_src>

<mosaic_0001>
module attributes {stable_mosaic.version = 11 : i64} {
  func.func @_mlp_kernel(%arg0: i32, %arg1: memref<16x32xf32, #tpu.memory_space<vmem>>, %arg2: memref<32x64xbf16, #tpu.memory_space<vmem>>, %arg3: memref<1x64xf32, #tpu.memory_space<vmem>>, %arg4: memref<64x64xbf16, #tpu.memory_space<vmem>>, %arg5: memref<1x64xf32, #tpu.memory_space<vmem>>, %arg6: memref<64x8xbf16, #tpu.memory_space<vmem>>, %arg7: memref<1x8xf32, #tpu.memory_space<vmem>>, %arg8: memref<16x8xf32, #tpu.memory_space<vmem>>) attributes {dimension_semantics = [#tpu.dimension_semantics<parallel>], iteration_bounds = array<i64: 1>, scalar_prefetch = 0 : i64, scratch_operands = 0 : i64, tpu.core_type = #tpu.core_type<tc>, window_params = [{transform_indices = @transform_0, window_bounds = array<i64: 16, 32>}, {pipeline_mode = #tpu.pipeline_mode<synchronous>, transform_indices = @transform_1, window_bounds = array<i64: 32, 64>}, {pipeline_mode = #tpu.pipeline_mode<synchronous>, transform_indices = @transform_2, window_bounds = array<i64: 1, 64>}, {pipeline_mode = #tpu.pipeline_mode<synchronous>, transform_indices = @transform_3, window_bounds = array<i64: 64, 64>}, {pipeline_mode = #tpu.pipeline_mode<synchronous>, transform_indices = @transform_4, window_bounds = array<i64: 1, 64>}, {pipeline_mode = #tpu.pipeline_mode<synchronous>, transform_indices = @transform_5, window_bounds = array<i64: 64, 8>}, {pipeline_mode = #tpu.pipeline_mode<synchronous>, transform_indices = @transform_6, window_bounds = array<i64: 1, 8>}, {transform_indices = @transform_7, window_bounds = array<i64: 16, 8>}]} {
    %c0 = arith.constant 0 : index
    %c0_0 = arith.constant 0 : index
    %0 = vector.load %arg1[%c0, %c0_0] : memref<16x32xf32, #tpu.memory_space<vmem>>, vector<16x32xf32>
    %1 = arith.truncf %0 : vector<16x32xf32> to vector<16x32xbf16>
    %c0_1 = arith.constant 0 : index
    %c0_2 = arith.constant 0 : index
    %2 = vector.load %arg2[%c0_1, %c0_2] : memref<32x64xbf16, #tpu.memory_space<vmem>>, vector<32x64xbf16>
    %cst = arith.constant dense<0.000000e+00> : vector<16x64xf32>
    %3 = tpu.matmul %1, %2, %cst {dimension_numbers = #tpu.dot_dimension_numbers<[1], [0], [0], [1], [0, 0, 1, 1], [], []>} : vector<16x32xbf16>, vector<32x64xbf16>, vector<16x64xf32> -> vector<16x64xf32>
    %c0_3 = arith.constant 0 : index
    %c0_4 = arith.constant 0 : index
    %4 = vector.load %arg3[%c0_3, %c0_4] : memref<1x64xf32, #tpu.memory_space<vmem>>, vector<1x64xf32>
    %5 = vector.broadcast %4 : vector<1x64xf32> to vector<16x64xf32>
    %6 = arith.addf %3, %5 : vector<16x64xf32>
    %cst_5 = arith.constant 0.000000e+00 : f32
    %7 = vector.broadcast %cst_5 : f32 to vector<16x64xf32>
    %8 = arith.maximumf %6, %7 : vector<16x64xf32>
    %9 = arith.truncf %8 : vector<16x64xf32> to vector<16x64xbf16>
    %c0_6 = arith.constant 0 : index
    %c0_7 = arith.constant 0 : index
    %10 = vector.load %arg4[%c0_6, %c0_7] : memref<64x64xbf16, #tpu.memory_space<vmem>>, vector<64x64xbf16>
    %cst_8 = arith.constant dense<0.000000e+00> : vector<16x64xf32>
    %11 = tpu.matmul %9, %10, %cst_8 {dimension_numbers = #tpu.dot_dimension_numbers<[1], [0], [0], [1], [0, 0, 1, 1], [], []>} : vector<16x64xbf16>, vector<64x64xbf16>, vector<16x64xf32> -> vector<16x64xf32>
    %c0_9 = arith.constant 0 : index
    %c0_10 = arith.constant 0 : index
    %12 = vector.load %arg5[%c0_9, %c0_10] : memref<1x64xf32, #tpu.memory_space<vmem>>, vector<1x64xf32>
    %13 = vector.broadcast %12 : vector<1x64xf32> to vector<16x64xf32>
    %14 = arith.addf %11, %13 : vector<16x64xf32>
    %cst_11 = arith.constant 0.000000e+00 : f32
    %15 = vector.broadcast %cst_11 : f32 to vector<16x64xf32>
    %16 = arith.maximumf %14, %15 : vector<16x64xf32>
    %17 = arith.truncf %16 : vector<16x64xf32> to vector<16x64xbf16>
    %c0_12 = arith.constant 0 : index
    %c0_13 = arith.constant 0 : index
    %18 = vector.load %arg6[%c0_12, %c0_13] : memref<64x8xbf16, #tpu.memory_space<vmem>>, vector<64x8xbf16>
    %cst_14 = arith.constant dense<0.000000e+00> : vector<16x8xf32>
    %19 = tpu.matmul %17, %18, %cst_14 {dimension_numbers = #tpu.dot_dimension_numbers<[1], [0], [0], [1], [0, 0, 1, 1], [], []>} : vector<16x64xbf16>, vector<64x8xbf16>, vector<16x8xf32> -> vector<16x8xf32>
    %c0_15 = arith.constant 0 : index
    %c0_16 = arith.constant 0 : index
    %20 = vector.load %arg7[%c0_15, %c0_16] : memref<1x8xf32, #tpu.memory_space<vmem>>, vector<1x8xf32>
    %21 = vector.broadcast %20 : vector<1x8xf32> to vector<16x8xf32>
    %22 = arith.addf %19, %21 : vector<16x8xf32>
    %c0_17 = arith.constant 0 : index
    %c0_18 = arith.constant 0 : index
    %23 = vector.load %arg8[%c0_17, %c0_18] : memref<16x8xf32, #tpu.memory_space<vmem>>, vector<16x8xf32>
    tpu.vector_store %arg8[%c0_17, %c0_18], %22 {strides = array<i32>} : memref<16x8xf32, #tpu.memory_space<vmem>>, vector<16x8xf32>,
    return
  }
  func.func @transform_0(%arg0: i32) -> (i32, i32) {
    %c0_i32 = arith.constant 0 : i32
    %c0_i32_0 = arith.constant 0 : i32
    return %arg0, %c0_i32 : i32, i32
  }
  func.func @transform_1(%arg0: i32) -> (i32, i32) {
    %c0_i32 = arith.constant 0 : i32
    %c0_i32_0 = arith.constant 0 : i32
    %c0_i32_1 = arith.constant 0 : i32
    return %c0_i32, %c0_i32_0 : i32, i32
  }
  func.func @transform_2(%arg0: i32) -> (i32, i32) {
    %c0_i32 = arith.constant 0 : i32
    %c0_i32_0 = arith.constant 0 : i32
    %c0_i32_1 = arith.constant 0 : i32
    return %c0_i32, %c0_i32_0 : i32, i32
  }
  func.func @transform_3(%arg0: i32) -> (i32, i32) {
    %c0_i32 = arith.constant 0 : i32
    %c0_i32_0 = arith.constant 0 : i32
    %c0_i32_1 = arith.constant 0 : i32
    return %c0_i32, %c0_i32_0 : i32, i32
  }
  func.func @transform_4(%arg0: i32) -> (i32, i32) {
    %c0_i32 = arith.constant 0 : i32
    %c0_i32_0 = arith.constant 0 : i32
    %c0_i32_1 = arith.constant 0 : i32
    return %c0_i32, %c0_i32_0 : i32, i32
  }
  func.func @transform_5(%arg0: i32) -> (i32, i32) {
    %c0_i32 = arith.constant 0 : i32
    %c0_i32_0 = arith.constant 0 : i32
    %c0_i32_1 = arith.constant 0 : i32
    return %c0_i32, %c0_i32_0 : i32, i32
  }
  func.func @transform_6(%arg0: i32) -> (i32, i32) {
    %c0_i32 = arith.constant 0 : i32
    %c0_i32_0 = arith.constant 0 : i32
    %c0_i32_1 = arith.constant 0 : i32
    return %c0_i32, %c0_i32_0 : i32, i32
  }
  func.func @transform_7(%arg0: i32) -> (i32, i32) {
    %c0_i32 = arith.constant 0 : i32
    %c0_i32_0 = arith.constant 0 : i32
    return %arg0, %c0_i32 : i32, i32
  }
}

</mosaic_0001>

<bundles_post_ra>
// kernel: multi_disc_domain_forward.1
= control target key start
LH: loop header
LB: loop body
LE: loop exit
PB: predicated region body
PF: predicated region fallthrough
CT: control target
= control target key end

     0   :  { %12 = vsyncpa [#allocation3], 0  ;;  %s393_s24 = smov [#allocation2]   ;;  %s500_s0 = inlined_call_operand.vmem [shape: f32[16,32], index: 0, kind: input, shape index: {}]   ;;  %s501_s1 = inlined_call_operand.hbm [shape: bf16[32,64], index: 1, kind: input, shape index: {}]   ;;  %s502_s2 = inlined_call_operand.vmem [shape: f32[1,64], index: 2, kind: input, shape index: {}]   ;;  %s503_s3 = inlined_call_operand.vmem [shape: bf16[64,64], index: 3, kind: input, shape index: {}]   ;;  %s504_s4 = inlined_call_operand.vmem [shape: f32[1,64], index: 4, kind: input, shape index: {}]   ;;  %s505_s5 = inlined_call_operand.vmem [shape: bf16[64,8], index: 5, kind: input, shape index: {}]   ;;  %s506_s6 = inlined_call_operand.vmem [shape: f32[1,8], index: 6, kind: input, shape index: {}]   ;;  %s507_s7 = inlined_call_operand.vmem [shape: f32[16,8], index: 7, kind: output, shape index: {}]  }
   0x1   :  { %s20_s25 = sshll.u32 %s393_s24, 4  ;;  %s369_s28 = scalar_lea.hbm %s501_s1, 256  ;;  %s21_s25 = int_to_ptr.vmem [resolvable:$true] %s20_s25 }
   0x2   :  { %p370_p0 = scmp.ne.s32.totalorder %s501_s1, %s369_s28  ;;  %p373_p1 = scmp.lt.u32.totalorder %s369_s28, %s501_s1 }
   0x4   :  { %p375_p2 = pnand %p373_p1, %p370_p0 }
   0x6   :  { %378 = shalt.err (!%p375_p2)
}
   0x7   :  { %s379_s10 = scalar_lea.vmem %s21_s25, 256  ;;  %p384_p4 = scmp.lt.s32.totalorder %s21_s25, %s21_s25 }
   0x8   :  { %p380_p3 = scmp.ne.s32.totalorder %s21_s25, %s379_s10  ;;  %p385_p5 = scmp.lt.s32.totalorder %s379_s10, %s379_s10 }
   0xa   :  { %p386_p6 = por %p385_p5, %p384_p4 }
   0xc   :  { %p387_p7 = pnand %p386_p6, %p380_p3 }
   0xe   :  { %390 = shalt.err (!%p387_p7)
}
   0xf   :  { %s394_s11 = smov 64   ;;  %s395_s12 = smov 4  }
  0x10   :  { %26 = dma.hbm_to_vmem [thread:$0]  %s501_s1, 256, %s21_s25, [#allocation3], %s394_s11, %s394_s11, %s395_s12  }
  0x11   :  { %391 = dma.done.wait [#allocation3], 256  }
  0x12   :  { %392 = vsyncadd [#allocation3], 4294967040  ;;  %v396_v0 = vmov 0.0   ;;  %vm397_vm0 = vmmov 0   ;;  %v359_v1 = vld [vmem:[#allocation2] sm:$0xff]   ;;  %v360_v2 = vld [vmem:[#allocation2 + $0x8] sm:$0xff]  }
  0x13   :  { %322 = vmatprep.subr.bf16.mxu0 %v396_v0  ;;  %326 = vmatprep.mubr.msk.bf16.mxu0 %vm397_vm0, %v396_v0  ;;  %v41_v3 = vld [vmem:[%s500_s0] sm:$0xff]  ;;  %v42_v4 = vld [vmem:[%s500_s0 + $0x8] sm:$0xff]  ;;  %vm67_vm1 = vcmask 261120   ;;  %v363_v8 = vld [vmem:[%s503_s3 + $0x10] sm:$0xff]   ;;  %vm154_vm2 = vcmask 523264   ;;  %vm285_vm3 = vcmask 64512  }
  0x14   :  { %330 = vmatprep.subr.bf16.mxu1 %v396_v0  ;;  %338 = vmatprep.mubr.msk.bf16.mxu1 %vm397_vm0, %v396_v0  ;;  %v361_v5 = vld [vmem:[%s503_s3] sm:$0xff]   ;;  %v362_v6 = vld [vmem:[%s503_s3 + $0x8] sm:$0xff]   ;;  %v43_v7 = vpack.c.bf16 %v42_v4, %v41_v3  ;;  %v364_v9 = vld [vmem:[%s503_s3 + $0x18] sm:$0xff]  }
  0x15   :  { %323 = vmatpush3.bf16.msra.mxu0 %v359_v1  ;;  %331 = vmatpush3.bf16.msra.mxu1 %v361_v5  ;;  %v365_v10 = vld [vmem:[%s505_s5] sm:$0xff]   ;;  %v366_v11 = vld [vmem:[%s505_s5 + $0x8] sm:$0xff]   ;;  %v367_v22 = vld [vmem:[%s505_s5 + $0x10] sm:$0xff]  }
  0x16   :  { %324 = vmatprep.subr.bf16.mxu0 %v396_v0  ;;  %332 = vmatprep.subr.bf16.mxu1 %v396_v0  ;;  %v293_v12 = vld [vmem:[%s502_s2] ss:$0 sm:$0xff]  ;;  %v368_v23 = vld [vmem:[%s505_s5 + $0x18] sm:$0xff]  }
  0x17   :  { %v297_v24 = vld [vmem:[%s504_s4] ss:$0 sm:$0xff] }
  0x18   :  { %v303_v34 = vld [vmem:[%s506_s6] ss:$0 sm:$0xff] }
  0x19   :  { %325 = vmatpush3.bf16.msra.mxu0 %v360_v2  ;;  %333 = vmatpush3.bf16.msra.mxu1 %v362_v6 }
  0x1a   :  { %342 = vmatprep.subr.bf16.mxu0 %v396_v0  ;;  %334 = vmatprep.subr.bf16.mxu1 %v396_v0 }
  0x1c   :  { %327 = vmatmul.mubr.msk.bf16.vlgmr.msra.gmra.mrb[0].mxu0 %vm67_vm1, %v43_v7 }
  0x1d   :  { %350 = vmatprep.mubr.msk.bf16.mxu0 %vm397_vm0, %v396_v0  ;;  %335 = vmatpush3.bf16.msra.mxu1 %v363_v8 }
  0x1e   :  { %336 = vmatprep.subr.bf16.mxu1 %v396_v0  ;;  %343 = vmatpush3.bf16.msra.mxu0 %v365_v10 }
  0x1f   :  { %344 = vmatprep.subr.bf16.mxu0 %v396_v0 }
  0x21   :  { %337 = vmatpush3.bf16.msra.mxu1 %v364_v9 }
  0x22   :  { %345 = vmatpush3.bf16.msra.mxu0 %v366_v11 }
  0x23   :  { %346 = vmatprep.subr.bf16.mxu0 %v396_v0 }
  0x26   :  { %347 = vmatpush3.bf16.msra.mxu0 %v367_v22 }
  0x27   :  { %348 = vmatprep.subr.bf16.mxu0 %v396_v0 }
  0x2a   :  { %349 = vmatpush3.bf16.msra.mxu0 %v368_v23 }
  0xef   :  { %v105_v13 = vpop.f32.mrb[0].mxu0 }
  0xf0   :  { %v106_v14 = vadd.f32 %v293_v12, %v105_v13  ;;  %v328_v15 = vpop.f32.mrb[1].mxu0 }
  0xf1   :  { %v108_v16 = vpop.f32.mrb[2].mxu0 }
  0xf2   :  { %v109_v17 = vadd.f32 %v293_v12, %v108_v16  ;;  %v329_v18 = vpop.f32.mrb[3].mxu0  ;;  %v112_v19 = vmax.f32 %v106_v14, 0.0 }
  0xf4   :  { %v113_v20 = vmax.f32 %v109_v17, 0.0 }
  0xf6   :  { %v114_v21 = vpack.c.bf16 %v113_v20, %v112_v19 }
  0xf8   :  { %339 = vmatmul.mubr.msk.bf16.vlgmr.msra.gmra.mrb[0].mxu1 %vm154_vm2, %v114_v21 }
 0x1cb   :  { %v192_v25 = vpop.f32.mrb[0].mxu1 }
 0x1cc   :  { %v193_v26 = vadd.f32 %v297_v24, %v192_v25  ;;  %v340_v27 = vpop.f32.mrb[1].mxu1 }
 0x1cd   :  { %v195_v28 = vpop.f32.mrb[2].mxu1 }
 0x1ce   :  { %v196_v29 = vadd.f32 %v297_v24, %v195_v28  ;;  %v341_v30 = vpop.f32.mrb[3].mxu1  ;;  %v199_v31 = vmax.f32 %v193_v26, 0.0 }
 0x1d0   :  { %v200_v32 = vmax.f32 %v196_v29, 0.0 }
 0x1d2   :  { %v201_v33 = vpack.c.bf16 %v200_v32, %v199_v31 }
 0x1d4   :  { %351 = vmatmul.mubr.msk.bf16.vlgmr.msra.gmra.mrb[4].mxu0 %vm154_vm2, %v201_v33 }
 0x2a7   :  { %v278_v35 = vpop.f32.mrb[4].mxu0 }
 0x2a8   :  { %v279_v36 = vadd.f32 %v303_v34, %v278_v35  ;;  %v352_v37 = vpop.f32.mrb[5].mxu0 }
 0x2a9   :  { %v281_v38 = vpop.f32.mrb[6].mxu0 }
 0x2aa   :  { %286 = vst.msk [vmem:[%s507_s7] sm:$0xff] %vm285_vm3, %v279_v36  ;;  %v282_v39 = vadd.f32 %v303_v34, %v281_v38  ;;  %v353_v40 = vpop.f32.mrb[7].mxu0 }
 0x2ac   :  { %287 = vst.msk [vmem:[%s507_s7 + $0x8] sm:$0xff] %vm285_vm3, %v282_v39 }
 0x2ad   :  { %292 = vsyncpa [#allocation3], 1 }

</bundles_post_ra>
